<compile_context>
chip_gen: v7x
topology: tpu7x:2x2x1
jax: 0.10.0
libtpu: 0.0.40
codegen_flags: <defaults>
</compile_context>

<pallas_src>
import jax
import jax.numpy as jnp
from jax.experimental import pallas as pl
from jax.experimental.pallas import tpu as pltpu


def _round_up(n, m):
    return ((n + m - 1) // m) * m


def dqn_kernel(x_ref, w1_ref, b1_ref, w2_ref, b2_ref, q_ref):
    # x_ref:  [tm, K]  (bf16)   w1_ref: [K, H]  (bf16)   b1_ref: [1, H] (f32)
    # w2_ref: [H, N]   (bf16)   b2_ref: [1, N]  (f32)    q_ref:  [tm, N] (f32)
    h = jnp.dot(x_ref[...], w1_ref[...], preferred_element_type=jnp.float32)
    h = jnp.maximum(h + b1_ref[...], 0.0)          # bias + ReLU in f32 (VPU)
    q = jnp.dot(h.astype(w2_ref.dtype), w2_ref[...],
                preferred_element_type=jnp.float32)
    q_ref[...] = q + b2_ref[...]


def prepare_dqn_params(w1, b1, w2, b2, compute_dtype=jnp.bfloat16):
    """Cast/reshape parameters once (outside the per-call hot path).
    w1: [state_dim, hidden], w2: [hidden, action_dim] (transposed vs PyTorch)."""
    hidden = w1.shape[1]
    action_dim = w2.shape[1]
    return (
        w1.astype(compute_dtype),
        jnp.reshape(b1, (1, hidden)).astype(jnp.float32),
        w2.astype(compute_dtype),
        jnp.reshape(b2, (1, action_dim)).astype(jnp.float32),
    )


def dqn_forward(x, params, *, block_m=512, min_pallas_batch=32):
    """x: [B, state_dim]; params from prepare_dqn_params -> Q: [B, action_dim] f32."""
    w1c, b1c, w2c, b2c = params
    B, state_dim = x.shape
    hidden = w1c.shape[1]
    action_dim = w2c.shape[1]

    # Tiny online-inference batches: pallas_call fixed cost dominates, let XLA
    # fuse the two small dots instead.
    if B < min_pallas_batch:
        xc = x.astype(w1c.dtype)
        h = jnp.maximum(
            jnp.dot(xc, w1c, preferred_element_type=jnp.float32) + b1c, 0.0)
        return jnp.dot(h.astype(w2c.dtype), w2c,
                       preferred_element_type=jnp.float32) + b2c

    # Batch tile: multiples of 16 (bf16 sublane packing), as large as block_m.
    tm = min(block_m, _round_up(B, 16))
    # Keep >= 2 grid steps when possible so the "parallel" batch axis actually
    # shards over v7x's 2 TensorCores (no-op on v5e/v6e, 1 TC).
    if _round_up(B, tm) // tm == 1 and tm >= 32 and tm % 32 == 0:
        tm //= 2
    b_pad = _round_up(B, tm)

    # Only the batch rows are (maybe) padded; K and N stay at their true sizes.
    x_c = x.astype(w1c.dtype)
    if b_pad != B:
        x_c = jnp.pad(x_c, ((0, b_pad - B), (0, 0)))

    grid = (b_pad // tm,)

    q = pl.pallas_call(
        dqn_kernel,
        out_shape=jax.ShapeDtypeStruct((b_pad, action_dim), jnp.float32),
        grid_spec=pltpu.PrefetchScalarGridSpec(
            num_scalar_prefetch=0,
            grid=grid,
            in_specs=[
                # Streamed per-step x tile, full-extent (unpadded) K axis.
                pl.BlockSpec((tm, state_dim), lambda i: (i, 0)),
                # VMEM-resident weights/biases (constant index_map -> fetched once).
                pl.BlockSpec((state_dim, hidden), lambda i: (0, 0)),
                pl.BlockSpec((1, hidden), lambda i: (0, 0)),
                pl.BlockSpec((hidden, action_dim), lambda i: (0, 0)),
                pl.BlockSpec((1, action_dim), lambda i: (0, 0)),
            ],
            # Narrow (full-extent N) output: only action_dim f32 per row hits HBM.
            out_specs=pl.BlockSpec((tm, action_dim), lambda i: (i, 0)),
        ),
        compiler_params=pltpu.CompilerParams(
            dimension_semantics=("parallel",),  # batch tiles shard on v7x TCs
        ),
    )(x_c, w1c, b1c, w2c, b2c)

    return q[:B] if b_pad != B else q


def dqn_reference(x, w1, b1, w2, b2, compute_dtype=jnp.bfloat16):
    """Pure-JAX reference with the same bf16 rounding of matmul inputs."""
    b1 = jnp.reshape(b1, (1, -1)).astype(jnp.float32)
    b2 = jnp.reshape(b2, (1, -1)).astype(jnp.float32)
    xc = x.astype(compute_dtype).astype(jnp.float32)
    w1c = w1.astype(compute_dtype).astype(jnp.float32)
    w2c = w2.astype(compute_dtype).astype(jnp.float32)
    h = jnp.maximum(xc @ w1c + b1, 0.0)
    hc = h.astype(compute_dtype).astype(jnp.float32)
    return hc @ w2c + b2


def init_dqn_params(key, state_dim, action_dim, hidden_dim=256):
    """Matches nn.Linear's U(-1/sqrt(fan_in), 1/sqrt(fan_in)); weights stored
    transposed vs PyTorch, i.e. [in_features, out_features]."""
    k1, k2, k3, k4 = jax.random.split(key, 4)
    bound1 = 1.0 / jnp.sqrt(jnp.float32(state_dim))
    bound2 = 1.0 / jnp.sqrt(jnp.float32(hidden_dim))
    w1 = jax.random.uniform(k1, (state_dim, hidden_dim), jnp.float32, -bound1, bound1)
    b1 = jax.random.uniform(k2, (1, hidden_dim), jnp.float32, -bound1, bound1)
    w2 = jax.random.uniform(k3, (hidden_dim, action_dim), jnp.float32, -bound2, bound2)
    b2 = jax.random.uniform(k4, (1, action_dim), jnp.float32, -bound2, bound2)
    return w1, b1, w2, b2


if __name__ == "__main__":
    key = jax.random.PRNGKey(0)
    k_params, k_x1, k_x2 = jax.random.split(key, 3)

    state_dim = 16
    action_dim = 8
    hidden_dim = 256

    w1, b1, w2, b2 = init_dqn_params(k_params, state_dim, action_dim, hidden_dim)
    params = prepare_dqn_params(w1, b1, w2, b2)   # one-time cast, off the hot path

    # Replay-buffer-sized batch: Pallas path, 2 batch tiles of 128 (megacore-able).
    x_big = jax.random.normal(k_x1, (256, state_dim), jnp.float32)
    q_big = dqn_forward(x_big, params)
    jax.block_until_ready(q_big)
    q_big_ref = dqn_reference(x_big, w1, b1, w2, b2)
    assert q_big.shape == (256, action_dim)
    assert jnp.allclose(q_big, q_big_ref, atol=1e-3, rtol=1e-3)

    # Tiny online-inference batch: routed to the fused jnp path.
    x_small = jax.random.normal(k_x2, (2, state_dim), jnp.float32)
    q_small = dqn_forward(x_small, params)
    jax.block_until_ready(q_small)
    q_small_ref = dqn_reference(x_small, w1, b1, w2, b2)
    assert q_small.shape == (2, action_dim)
    assert jnp.allclose(q_small, q_small_ref, atol=1e-3, rtol=1e-3)

    # Same tiny batch forced through the Pallas kernel (exercises row padding).
    q_small_pl = dqn_forward(x_small, params, min_pallas_batch=0)
    jax.block_until_ready(q_small_pl)
    assert q_small_pl.shape == (2, action_dim)
    assert jnp.allclose(q_small_pl, q_small_ref, atol=1e-3, rtol=1e-3)

    print("KERNEL_OK")
</pallas_src>

<mosaic_0001>
module attributes {stable_mosaic.version = 11 : i64} {
  func.func @dqn_kernel(%arg0: i32, %arg1: memref<128x16xbf16, #tpu.memory_space<vmem>>, %arg2: memref<16x256xbf16, #tpu.memory_space<vmem>>, %arg3: memref<1x256xf32, #tpu.memory_space<vmem>>, %arg4: memref<256x8xbf16, #tpu.memory_space<vmem>>, %arg5: memref<1x8xf32, #tpu.memory_space<vmem>>, %arg6: memref<128x8xf32, #tpu.memory_space<vmem>>) attributes {dimension_semantics = [#tpu.dimension_semantics<parallel>], iteration_bounds = array<i64: 2>, scalar_prefetch = 0 : i64, scratch_operands = 0 : i64, tpu.core_type = #tpu.core_type<tc>, window_params = [{transform_indices = @transform_0, window_bounds = array<i64: 128, 16>}, {pipeline_mode = #tpu.pipeline_mode<synchronous>, transform_indices = @transform_1, window_bounds = array<i64: 16, 256>}, {pipeline_mode = #tpu.pipeline_mode<synchronous>, transform_indices = @transform_2, window_bounds = array<i64: 1, 256>}, {pipeline_mode = #tpu.pipeline_mode<synchronous>, transform_indices = @transform_3, window_bounds = array<i64: 256, 8>}, {pipeline_mode = #tpu.pipeline_mode<synchronous>, transform_indices = @transform_4, window_bounds = array<i64: 1, 8>}, {transform_indices = @transform_5, window_bounds = array<i64: 128, 8>}]} {
    %c0 = arith.constant 0 : index
    %c0_0 = arith.constant 0 : index
    %0 = vector.load %arg1[%c0, %c0_0] : memref<128x16xbf16, #tpu.memory_space<vmem>>, vector<128x16xbf16>
    %c0_1 = arith.constant 0 : index
    %c0_2 = arith.constant 0 : index
    %1 = vector.load %arg2[%c0_1, %c0_2] : memref<16x256xbf16, #tpu.memory_space<vmem>>, vector<16x256xbf16>
    %cst = arith.constant dense<0.000000e+00> : vector<128x256xf32>
    %2 = tpu.matmul %0, %1, %cst {dimension_numbers = #tpu.dot_dimension_numbers<[1], [0], [0], [1], [0, 0, 1, 1], [], []>} : vector<128x16xbf16>, vector<16x256xbf16>, vector<128x256xf32> -> vector<128x256xf32>
    %c0_3 = arith.constant 0 : index
    %c0_4 = arith.constant 0 : index
    %3 = vector.load %arg3[%c0_3, %c0_4] : memref<1x256xf32, #tpu.memory_space<vmem>>, vector<1x256xf32>
    %4 = vector.broadcast %3 : vector<1x256xf32> to vector<128x256xf32>
    %5 = arith.addf %2, %4 : vector<128x256xf32>
    %cst_5 = arith.constant 0.000000e+00 : f32
    %6 = vector.broadcast %cst_5 : f32 to vector<128x256xf32>
    %7 = arith.maximumf %5, %6 : vector<128x256xf32>
    %8 = arith.truncf %7 : vector<128x256xf32> to vector<128x256xbf16>
    %c0_6 = arith.constant 0 : index
    %c0_7 = arith.constant 0 : index
    %9 = vector.load %arg4[%c0_6, %c0_7] : memref<256x8xbf16, #tpu.memory_space<vmem>>, vector<256x8xbf16>
    %cst_8 = arith.constant dense<0.000000e+00> : vector<128x8xf32>
    %10 = tpu.matmul %8, %9, %cst_8 {dimension_numbers = #tpu.dot_dimension_numbers<[1], [0], [0], [1], [0, 0, 1, 1], [], []>} : vector<128x256xbf16>, vector<256x8xbf16>, vector<128x8xf32> -> vector<128x8xf32>
    %c0_9 = arith.constant 0 : index
    %c0_10 = arith.constant 0 : index
    %11 = vector.load %arg5[%c0_9, %c0_10] : memref<1x8xf32, #tpu.memory_space<vmem>>, vector<1x8xf32>
    %12 = vector.broadcast %11 : vector<1x8xf32> to vector<128x8xf32>
    %13 = arith.addf %10, %12 : vector<128x8xf32>
    %c0_11 = arith.constant 0 : index
    %c0_12 = arith.constant 0 : index
    %14 = vector.load %arg6[%c0_11, %c0_12] : memref<128x8xf32, #tpu.memory_space<vmem>>, vector<128x8xf32>
    tpu.vector_store %arg6[%c0_11, %c0_12], %13 {strides = array<i32>} : memref<128x8xf32, #tpu.memory_space<vmem>>, vector<128x8xf32>,
    return
  }
  func.func @transform_0(%arg0: i32) -> (i32, i32) {
    %c0_i32 = arith.constant 0 : i32
    %c0_i32_0 = arith.constant 0 : i32
    return %arg0, %c0_i32 : i32, i32
  }
  func.func @transform_1(%arg0: i32) -> (i32, i32) {
    %c0_i32 = arith.constant 0 : i32
    %c0_i32_0 = arith.constant 0 : i32
    %c0_i32_1 = arith.constant 0 : i32
    return %c0_i32, %c0_i32_0 : i32, i32
  }
  func.func @transform_2(%arg0: i32) -> (i32, i32) {
    %c0_i32 = arith.constant 0 : i32
    %c0_i32_0 = arith.constant 0 : i32
    %c0_i32_1 = arith.constant 0 : i32
    return %c0_i32, %c0_i32_0 : i32, i32
  }
  func.func @transform_3(%arg0: i32) -> (i32, i32) {
    %c0_i32 = arith.constant 0 : i32
    %c0_i32_0 = arith.constant 0 : i32
    %c0_i32_1 = arith.constant 0 : i32
    return %c0_i32, %c0_i32_0 : i32, i32
  }
  func.func @transform_4(%arg0: i32) -> (i32, i32) {
    %c0_i32 = arith.constant 0 : i32
    %c0_i32_0 = arith.constant 0 : i32
    %c0_i32_1 = arith.constant 0 : i32
    return %c0_i32, %c0_i32_0 : i32, i32
  }
  func.func @transform_5(%arg0: i32) -> (i32, i32) {
    %c0_i32 = arith.constant 0 : i32
    %c0_i32_0 = arith.constant 0 : i32
    return %arg0, %c0_i32 : i32, i32
  }
}

</mosaic_0001>

<bundles_post_ra>
// kernel: tpu_custom_call.1
= control target key start
LH: loop header
LB: loop body
LE: loop exit
PB: predicated region body
PF: predicated region fallthrough
CT: control target
= control target key end

     0   :  { %s1001_s18 = smov 0   ;;  %s1188_s0 = inlined_call_operand.vmem [shape: bf16[256,16], index: 0, kind: input, shape index: {}]   ;;  %s1189_s1 = inlined_call_operand.vmem [shape: bf16[16,256], index: 1, kind: input, shape index: {}]   ;;  %s1190_s2 = inlined_call_operand.vmem [shape: f32[1,256], index: 2, kind: input, shape index: {}]   ;;  %s1191_s3 = inlined_call_operand.vmem [shape: bf16[256,8], index: 3, kind: input, shape index: {}]   ;;  %s1192_s4 = inlined_call_operand.vmem [shape: f32[1,8], index: 4, kind: input, shape index: {}]   ;;  %s1193_s5 = inlined_call_operand.vmem [shape: f32[256,8], index: 5, kind: output, shape index: {}]  }
   0x1 LB: > { %s800_s19 = sadd.s32 4294967295, %s968_s18   ;;  %p804_p0 = scmp.ge.s32.totalorder %s968_s18, 1  ;;  %s968_s18 = sphi %s1001_s18, %s15_s18  }
   0x2   : > { %p188_p1 = scmp.lt.s32.totalorder %s968_s18, 3 }
   0x4   : > { %p189_p2 = pnand %p804_p0, %p188_p1 }
   0x5   : > { %v935_v0 = vld [vmem:[%s1189_s1 + $0x4] ss:$8 sps:$4 sm:$0xff] (!%p189_p2)   ;;  %s805_s22 = sshll.u32 (!%p189_p2), %s800_s19, 4  ;;  %v937_v1 = vld [vmem:[%s1189_s1] ss:$8 sps:$4 sm:$0xff] (!%p189_p2)   ;;  %v970_v2 = vmov (!%p189_p2), 0   ;;  %v249_v27 = vlaneseq (!%p189_p2) }
   0x6   : > { %192 = sbr.rel (%p189_p2) target bundleno = 515 (0x203), region = 40  ;;  %366 = vmatprep.mubr.bf16.mxu0 (!%p189_p2), %v970_v2  ;;  %p217_p3 = scmp.lt.s32.totalorder (!%p189_p2), %s805_s22, 31  ;;  %334 = vmatprep.subr.bf16.mxu0 (!%p189_p2), %v935_v0  ;;  %v946_v3 = vld [vmem:[%s1191_s3 + $0x40] sm:$0xff] (!%p189_p2)   ;;  %v948_v5 = vld [vmem:[%s1191_s3 + $0x48] sm:$0xff] (!%p189_p2)   ;;  %vm309_vm0 = vcmask (!%p189_p2), 130048   ;;  %v950_v8 = vld [vmem:[%s1191_s3 + $0x50] sm:$0xff] (!%p189_p2)  }
   0x7   : > { %335 = vmatpush1.bf16.msra.mxu0 (!%p189_p2), %v937_v1  ;;  %v947_v4 = vld [vmem:[%s1191_s3] sm:$0xff] (!%p189_p2)   ;;  %910 = vmatprep.subr.bf16.mxu1 (!%p189_p2), %v946_v3  ;;  %v949_v6 = vld [vmem:[%s1191_s3 + $0x8] sm:$0xff] (!%p189_p2)   ;;  %v951_v10 = vld [vmem:[%s1191_s3 + $0x10] sm:$0xff] (!%p189_p2)   ;;  %v250_v28 = vshrl.u32 (!%p189_p2), %v249_v27, 7  ;;  %vm727_vm1 = vcmask (!%p189_p2), 64512  }
   0x8   : > { %846 = vmatprep.subr.bf16.mxu0 (!%p189_p2), %v946_v3  ;;  %918 = vmatpush3.bf16.msra.mxu1 (!%p189_p2), %v947_v4  ;;  %v952_v11 = vld [vmem:[%s1191_s3 + $0x58] sm:$0xff] (!%p189_p2)   ;;  %v954_v13 = vld [vmem:[%s1191_s3 + $0x60] sm:$0xff] (!%p189_p2)   ;;  %v956_v16 = vld [vmem:[%s1191_s3 + $0x68] sm:$0xff] (!%p189_p2)  }
   0x9   : > { %911 = vmatprep.subr.bf16.mxu1 (!%p189_p2), %v948_v5  ;;  %v953_v12 = vld [vmem:[%s1191_s3 + $0x18] sm:$0xff] (!%p189_p2)   ;;  %v955_v15 = vld [vmem:[%s1191_s3 + $0x20] sm:$0xff] (!%p189_p2)   ;;  %v957_v22 = vld [vmem:[%s1191_s3 + $0x28] sm:$0xff] (!%p189_p2)   ;;  %v251_v29 = vsub.s32 (!%p189_p2), 0, %v250_v28  ;;  %v255_v31 = vsub.s32 (!%p189_p2), 1, %v250_v28 }
   0xa   : > { %v958_v23 = vld [vmem:[%s1191_s3 + $0x70] sm:$0xff] (!%p189_p2)   ;;  %v960_v25 = vld [vmem:[%s1191_s3 + $0x78] sm:$0xff] (!%p189_p2)   ;;  %v247_v30 = vld [vmem:[%s1190_s2] sm:$0x3] (!%p189_p2) }
   0xb   : > { %v959_v24 = vld [vmem:[%s1191_s3 + $0x30] sm:$0xff] (!%p189_p2)   ;;  %v961_v26 = vld [vmem:[%s1191_s3 + $0x38] sm:$0xff] (!%p189_p2)   ;;  %v1090_v32 = vrot.slane (!%p189_p2), %v247_v30, %v251_v29  ;;  %v1092_v33 = vrot.slane (!%p189_p2), %v247_v30, %v255_v31 }
   0xc   : > { %919 = vmatpush3.bf16.msra.mxu1 (!%p189_p2), %v949_v6 }
   0xd   : > { %s1195_s22 = smov (!%p217_p3, %s805_s22), 31  ;;  %912 = vmatprep.subr.bf16.mxu1 %v950_v8 }
   0xe   : > { %s806_s6 = sshll.u32 %s1195_s22, 2  ;;  %s808_s15 = sshll.u32 %s1195_s22, 3 }
   0xf   : > { %s1030_s9 = scalar_lea.vmem %s1188_s0, %s806_s6  ;;  %s1135_s21 = scalar_lea.vmem %s1193_s5, %s808_s15 }
  0x10   : > { %v938_v7 = vld [vmem:[%s1030_s9] sm:$0xff]   ;;  %v939_v9 = vld [vmem:[%s1030_s9 + $0x8] sm:$0xff]   ;;  %920 = vmatpush3.bf16.msra.mxu1 %v951_v10  ;;  %v940_v14 = vld [vmem:[%s1030_s9 + $0x10] sm:$0xff]  }
  0x11   : > { %819 = vmatmul.mubr.msk.bf16.vlgmr.msra.gmra.mrb[0].mxu0 %vm309_vm0, %v938_v7  ;;  %913 = vmatprep.subr.bf16.mxu1 %v952_v11  ;;  %v941_v17 = vld [vmem:[%s1030_s9 + $0x18] sm:$0xff]   ;;  %v942_v18 = vld [vmem:[%s1030_s9 + $0x20] sm:$0xff]   ;;  %v943_v19 = vld [vmem:[%s1030_s9 + $0x28] sm:$0xff]  }
  0x12   : > { %376 = vmatprep.mubr.bf16.mxu0 %v970_v2  ;;  %847 = vmatpush3.bf16.msra.mxu0 %v947_v4  ;;  %v944_v20 = vld [vmem:[%s1030_s9 + $0x30] sm:$0xff]   ;;  %v945_v21 = vld [vmem:[%s1030_s9 + $0x38] sm:$0xff]  }
  0x13   : > { %848 = vmatprep.subr.bf16.mxu0 %v948_v5 }
  0x14   : > { %921 = vmatpush3.bf16.msra.mxu1 %v953_v12 }
  0x15   : > { %914 = vmatprep.subr.bf16.mxu1 %v954_v13 }
  0x16   : > { %849 = vmatpush3.bf16.msra.mxu0 %v949_v6 }
  0x17   : > { %850 = vmatprep.subr.bf16.mxu0 %v950_v8 }
  0x18   : > { %922 = vmatpush3.bf16.msra.mxu1 %v955_v15 }
  0x19   : > { %820 = vmatmul.mubr.msk.bf16.gmra.mrb[4].mxu0 %vm309_vm0, %v939_v9  ;;  %915 = vmatprep.subr.bf16.mxu1 %v956_v16 }
  0x1a   : > { %386 = vmatprep.mubr.bf16.mxu0 %v970_v2  ;;  %851 = vmatpush3.bf16.msra.mxu0 %v951_v10 }
  0x1b   : > { %852 = vmatprep.subr.bf16.mxu0 %v952_v11 }
  0x1c   : > { %923 = vmatpush3.bf16.msra.mxu1 %v957_v22 }
  0x1d   : > { %916 = vmatprep.subr.bf16.mxu1 %v958_v23 }
  0x1e   : > { %853 = vmatpush3.bf16.msra.mxu0 %v953_v12 }
  0x1f   : > { %854 = vmatprep.subr.bf16.mxu0 %v954_v13 }
  0x20   : > { %924 = vmatpush3.bf16.msra.mxu1 %v959_v24 }
  0x21   : > { %821 = vmatmul.mubr.msk.bf16.gmra.mrb[8].mxu0 %vm309_vm0, %v940_v14  ;;  %917 = vmatprep.subr.bf16.mxu1 %v960_v25 }
  0x22   : > { %396 = vmatprep.mubr.bf16.mxu0 %v970_v2  ;;  %855 = vmatpush3.bf16.msra.mxu0 %v955_v15 }
  0x23   : > { %856 = vmatprep.subr.bf16.mxu0 %v956_v16 }
  0x24   : > { %925 = vmatpush3.bf16.msra.mxu1 %v961_v26 }
  0x26   : > { %857 = vmatpush3.bf16.msra.mxu0 %v957_v22 }
  0x27   : > { %858 = vmatprep.subr.bf16.mxu0 %v958_v23 }
  0x29   : > { %822 = vmatmul.mubr.msk.bf16.gmra.mrb[12].mxu0 %vm309_vm0, %v941_v17 }
  0x2a   : > { %406 = vmatprep.mubr.bf16.mxu0 %v970_v2  ;;  %859 = vmatpush3.bf16.msra.mxu0 %v959_v24 }
  0x2b   : > { %860 = vmatprep.subr.bf16.mxu0 %v960_v25 }
  0x2e   : > { %861 = vmatpush3.bf16.msra.mxu0 %v961_v26 }
  0x31   : > { %823 = vmatmul.mubr.msk.bf16.gmra.mrb[16].mxu0 %vm309_vm0, %v942_v18 }
  0x32   : > { %416 = vmatprep.mubr.bf16.mxu0 %v970_v2 }
  0x39   : > { %824 = vmatmul.mubr.msk.bf16.gmra.mrb[20].mxu0 %vm309_vm0, %v943_v19 }
  0x3a   : > { %426 = vmatprep.mubr.bf16.mxu0 %v970_v2 }
  0x41   : > { %825 = vmatmul.mubr.msk.bf16.gmra.mrb[24].mxu0 %vm309_vm0, %v944_v20 }
  0x42   : > { %436 = vmatprep.mubr.bf16.mxu0 %v970_v2 }
  0x49   : > { %826 = vmatmul.mubr.msk.bf16.gmra.mrb[28].mxu0 %vm309_vm0, %v945_v21 }
  0xe4   : > { %v368_v34 = vpop.f32.mrb[0].mxu0 }
  0xe5   : > { %v369_v35 = vadd.f32 %v368_v34, %v1090_v32  ;;  %v370_v36 = vpop.f32.mrb[1].mxu0 }
  0xe6   : > { %v371_v37 = vadd.f32 %v370_v36, %v1092_v33  ;;  %v372_v38 = vpop.f32.mrb[2].mxu0 }
  0xe7   : > { %v373_v39 = vadd.f32 %v372_v38, %v1090_v32  ;;  %v374_v40 = vpop.f32.mrb[3].mxu0  ;;  %v447_v42 = vmax.f32 %v369_v35, 0.0 }
  0xe8   : > { %v375_v41 = vadd.f32 %v374_v40, %v1092_v33  ;;  %v448_v44 = vmax.f32 %v371_v37, 0.0 }
  0xe9   : > { %v449_v43 = vmax.f32 %v373_v39, 0.0 }
  0xea   : > { %v450_v45 = vmax.f32 %v375_v41, 0.0 }
  0xeb   : > { %v479_v46 = vpack.c.bf16 %v449_v43, %v447_v42 }
  0xec   : > { %v480_v47 = vpack.c.bf16 %v450_v45, %v448_v44  ;;  %v378_v48 = vpop.f32.mrb[4].mxu0 }
  0xed   : > { %v379_v49 = vadd.f32 %v378_v48, %v1090_v32  ;;  %v380_v50 = vpop.f32.mrb[5].mxu0 }
  0xee   : > { %v381_v51 = vadd.f32 %v380_v50, %v1092_v33  ;;  %v382_v52 = vpop.f32.mrb[6].mxu0  ;;  %662 = vmatprep.mubr.bf16.mxu0 %v480_v47 }
  0xef   : > { %v383_v53 = vadd.f32 %v382_v52, %v1090_v32  ;;  %v384_v54 = vpop.f32.mrb[7].mxu0  ;;  %663 = vmatmul.mubr.bf16.vlgmr.msra.gmra.mrb[32].mxu0 %v479_v46  ;;  %v451_v56 = vmax.f32 %v379_v49, 0.0 }
  0xf0   : > { %v385_v55 = vadd.f32 %v384_v54, %v1092_v33  ;;  %v452_v58 = vmax.f32 %v381_v51, 0.0 }
  0xf1   : > { %v453_v57 = vmax.f32 %v383_v53, 0.0 }
  0xf2   : > { %v454_v59 = vmax.f32 %v385_v55, 0.0 }
  0xf3   : > { %v481_v60 = vpack.c.bf16 %v453_v57, %v451_v56 }
  0xf4   : > { %v388_v61 = vpop.f32.mrb[8].mxu0  ;;  %v482_v62 = vpack.c.bf16 %v454_v59, %v452_v58 }
  0xf5   : > { %v389_v63 = vadd.f32 %v388_v61, %v1090_v32  ;;  %v390_v0 = vpop.f32.mrb[9].mxu0 }
  0xf6   : > { %v391_v1 = vadd.f32 %v390_v0, %v1092_v33  ;;  %v392_v2 = vpop.f32.mrb[10].mxu0  ;;  %670 = vmatprep.mubr.bf16.mxu1 %v482_v62 }
  0xf7   : > { %v393_v3 = vadd.f32 %v392_v2, %v1090_v32  ;;  %v394_v4 = vpop.f32.mrb[11].mxu0  ;;  %671 = vmatmul.mubr.bf16.vlgmr.msra.gmra.mrb[0].mxu1 %v481_v60  ;;  %v455_v6 = vmax.f32 %v389_v63, 0.0 }
  0xf8   : > { %v395_v5 = vadd.f32 %v394_v4, %v1092_v33  ;;  %v456_v8 = vmax.f32 %v391_v1, 0.0 }
  0xf9   : > { %v457_v7 = vmax.f32 %v393_v3, 0.0 }
  0xfa   : > { %v458_v9 = vmax.f32 %v395_v5, 0.0 }
  0xfb   : > { %v483_v10 = vpack.c.bf16 %v457_v7, %v455_v6 }
  0xfc   : > { %v484_v11 = vpack.c.bf16 %v458_v9, %v456_v8  ;;  %v398_v12 = vpop.f32.mrb[12].mxu0 }
  0xfd   : > { %v399_v13 = vadd.f32 %v398_v12, %v1090_v32  ;;  %v400_v14 = vpop.f32.mrb[13].mxu0 }
  0xfe   : > { %v401_v15 = vadd.f32 %v400_v14, %v1092_v33  ;;  %v402_v16 = vpop.f32.mrb[14].mxu0  ;;  %678 = vmatprep.mubr.bf16.mxu1 %v484_v11 }
  0xff   : > { %v403_v17 = vadd.f32 %v402_v16, %v1090_v32  ;;  %v404_v18 = vpop.f32.mrb[15].mxu0  ;;  %679 = vmatmul.mubr.bf16.gmra.mrb[4].mxu1 %v483_v10  ;;  %v459_v20 = vmax.f32 %v399_v13, 0.0 }
 0x100   : > { %v405_v19 = vadd.f32 %v404_v18, %v1092_v33  ;;  %v460_v22 = vmax.f32 %v401_v15, 0.0 }
 0x101   : > { %v461_v21 = vmax.f32 %v403_v17, 0.0 }
 0x102   : > { %v462_v23 = vmax.f32 %v405_v19, 0.0 }
 0x103   : > { %v485_v24 = vpack.c.bf16 %v461_v21, %v459_v20  ;;  %v1130_v21 = vld [vmem:[%s1192_s4] ss:$0 sm:$0xff] }
 0x104   : > { %v486_v25 = vpack.c.bf16 %v462_v23, %v460_v22  ;;  %v408_v26 = vpop.f32.mrb[16].mxu0 }
 0x105   : > { %v409_v27 = vadd.f32 %v408_v26, %v1090_v32  ;;  %v410_v28 = vpop.f32.mrb[17].mxu0 }
 0x106   : > { %v411_v29 = vadd.f32 %v410_v28, %v1092_v33  ;;  %v412_v30 = vpop.f32.mrb[18].mxu0  ;;  %686 = vmatprep.mubr.bf16.mxu1 %v486_v25 }
 0x107   : > { %v413_v31 = vadd.f32 %v412_v30, %v1090_v32  ;;  %v414_v34 = vpop.f32.mrb[19].mxu0  ;;  %687 = vmatmul.mubr.bf16.gmra.mrb[8].mxu1 %v485_v24  ;;  %v463_v36 = vmax.f32 %v409_v27, 0.0 }
 0x108   : > { %v415_v35 = vadd.f32 %v414_v34, %v1092_v33  ;;  %v464_v38 = vmax.f32 %v411_v29, 0.0 }
 0x109   : > { %v465_v37 = vmax.f32 %v413_v31, 0.0 }
 0x10a   : > { %v466_v39 = vmax.f32 %v415_v35, 0.0 }
 0x10b   : > { %v487_v40 = vpack.c.bf16 %v465_v37, %v463_v36 }
 0x10c   : > { %v488_v41 = vpack.c.bf16 %v466_v39, %v464_v38  ;;  %v418_v42 = vpop.f32.mrb[20].mxu0 }
 0x10d   : > { %v419_v43 = vadd.f32 %v418_v42, %v1090_v32  ;;  %v420_v44 = vpop.f32.mrb[21].mxu0 }
 0x10e   : > { %v421_v45 = vadd.f32 %v420_v44, %v1092_v33  ;;  %v422_v46 = vpop.f32.mrb[22].mxu0  ;;  %694 = vmatprep.mubr.bf16.mxu1 %v488_v41 }
 0x10f   : > { %v423_v47 = vadd.f32 %v422_v46, %v1090_v32  ;;  %v424_v48 = vpop.f32.mrb[23].mxu0  ;;  %695 = vmatmul.mubr.bf16.gmra.mrb[12].mxu1 %v487_v40  ;;  %v467_v50 = vmax.f32 %v419_v43, 0.0 }
 0x110   : > { %v425_v49 = vadd.f32 %v424_v48, %v1092_v33  ;;  %v468_v52 = vmax.f32 %v421_v45, 0.0 }
 0x111   : > { %v469_v51 = vmax.f32 %v423_v47, 0.0 }
 0x112   : > { %v470_v53 = vmax.f32 %v425_v49, 0.0 }
 0x113   : > { %v489_v54 = vpack.c.bf16 %v469_v51, %v467_v50 }
 0x114   : > { %v490_v55 = vpack.c.bf16 %v470_v53, %v468_v52  ;;  %v428_v56 = vpop.f32.mrb[24].mxu0 }
 0x115   : > { %v429_v57 = vadd.f32 %v428_v56, %v1090_v32  ;;  %v430_v58 = vpop.f32.mrb[25].mxu0 }
 0x116   : > { %v431_v59 = vadd.f32 %v430_v58, %v1092_v33  ;;  %v432_v60 = vpop.f32.mrb[26].mxu0  ;;  %702 = vmatprep.mubr.bf16.mxu1 %v490_v55 }
 0x117   : > { %v433_v61 = vadd.f32 %v432_v60, %v1090_v32  ;;  %v434_v62 = vpop.f32.mrb[27].mxu0  ;;  %703 = vmatmul.mubr.bf16.gmra.mrb[16].mxu1 %v489_v54  ;;  %v471_v0 = vmax.f32 %v429_v57, 0.0 }
 0x118   : > { %v435_v63 = vadd.f32 %v434_v62, %v1092_v33  ;;  %v472_v2 = vmax.f32 %v431_v59, 0.0 }
 0x119   : > { %v473_v1 = vmax.f32 %v433_v61, 0.0 }
 0x11a   : > { %v474_v3 = vmax.f32 %v435_v63, 0.0 }
 0x11b   : > { %v491_v4 = vpack.c.bf16 %v473_v1, %v471_v0 }
 0x11c   : > { %v492_v5 = vpack.c.bf16 %v474_v3, %v472_v2  ;;  %v438_v6 = vpop.f32.mrb[28].mxu0 }
 0x11d   : > { %v439_v7 = vadd.f32 %v438_v6, %v1090_v32  ;;  %v440_v8 = vpop.f32.mrb[29].mxu0 }
 0x11e   : > { %v441_v9 = vadd.f32 %v440_v8, %v1092_v33  ;;  %v442_v10 = vpop.f32.mrb[30].mxu0  ;;  %710 = vmatprep.mubr.bf16.mxu1 %v492_v5 }
 0x11f   : > { %v443_v11 = vadd.f32 %v442_v10, %v1090_v32  ;;  %v444_v12 = vpop.f32.mrb[31].mxu0  ;;  %711 = vmatmul.mubr.bf16.gmra.mrb[20].mxu1 %v491_v4  ;;  %v475_v14 = vmax.f32 %v439_v7, 0.0 }
 0x120   : > { %v445_v13 = vadd.f32 %v444_v12, %v1092_v33  ;;  %v476_v16 = vmax.f32 %v441_v9, 0.0 }
 0x121   : > { %v477_v15 = vmax.f32 %v443_v11, 0.0 }
 0x122   : > { %v478_v17 = vmax.f32 %v445_v13, 0.0 }
 0x123   : > { %v493_v18 = vpack.c.bf16 %v477_v15, %v475_v14 }
 0x124   : > { %v494_v19 = vpack.c.bf16 %v478_v17, %v476_v16 }
 0x126   : > { %718 = vmatprep.mubr.bf16.mxu1 %v494_v19 }
 0x127   : > { %719 = vmatmul.mubr.bf16.gmra.mrb[24].mxu1 %v493_v18 }
 0x1c2   : > { %v862_v20 = vpop.f32.mrb[32].mxu0 }
 0x1c3   : > { %v863_v32 = vpop.f32.mrb[33].mxu0 }
 0x1c4   : > { %v864_v22 = vadd.f32 %v863_v32, %v862_v20  ;;  %v865_v23 = vpop.f32.mrb[34].mxu0 }
 0x1c5   : > { %v866_v33 = vpop.f32.mrb[35].mxu0 }
 0x1c6   : > { %v665_v24 = vadd.f32 %v864_v22, %v1130_v21  ;;  %v867_v25 = vadd.f32 %v866_v33, %v865_v23 }
 0x1c8   : > { %728 = vst.msk [vmem:[%s1135_s21] sm:$0xff] %vm727_vm1, %v665_v24  ;;  %v668_v26 = vadd.f32 %v867_v25, %v1130_v21 }
 0x1ca   : > { %729 = vst.msk [vmem:[%s1135_s21 + $0x8] sm:$0xff] %vm727_vm1, %v668_v26  ;;  %v868_v27 = vpop.f32.mrb[0].mxu1 }
 0x1cb   : > { %v869_v28 = vpop.f32.mrb[1].mxu1 }
 0x1cc   : > { %v870_v29 = vadd.f32 %v869_v28, %v868_v27  ;;  %v871_v30 = vpop.f32.mrb[2].mxu1 }
 0x1cd   : > { %v872_v31 = vpop.f32.mrb[3].mxu1 }
 0x1ce   : > { %v673_v34 = vadd.f32 %v870_v29, %v1130_v21  ;;  %v873_v35 = vadd.f32 %v872_v31, %v871_v30 }
 0x1d0   : > { %730 = vst.msk [vmem:[%s1135_s21 + $0x10] sm:$0xff] %vm727_vm1, %v673_v34  ;;  %v676_v36 = vadd.f32 %v873_v35, %v1130_v21 }
 0x1d2   : > { %731 = vst.msk [vmem:[%s1135_s21 + $0x18] sm:$0xff] %vm727_vm1, %v676_v36  ;;  %v874_v37 = vpop.f32.mrb[4].mxu1 }
 0x1d3   : > { %v875_v38 = vpop.f32.mrb[5].mxu1 }
 0x1d4   : > { %v876_v39 = vadd.f32 %v875_v38, %v874_v37  ;;  %v877_v40 = vpop.f32.mrb[6].mxu1 }
 0x1d5   : > { %v878_v41 = vpop.f32.mrb[7].mxu1 }
 0x1d6   : > { %v681_v42 = vadd.f32 %v876_v39, %v1130_v21  ;;  %v879_v43 = vadd.f32 %v878_v41, %v877_v40 }
 0x1d8   : > { %732 = vst.msk [vmem:[%s1135_s21 + $0x20] sm:$0xff] %vm727_vm1, %v681_v42  ;;  %v684_v44 = vadd.f32 %v879_v43, %v1130_v21 }
 0x1da   : > { %733 = vst.msk [vmem:[%s1135_s21 + $0x28] sm:$0xff] %vm727_vm1, %v684_v44  ;;  %v880_v45 = vpop.f32.mrb[8].mxu1 }
 0x1db   : > { %v881_v46 = vpop.f32.mrb[9].mxu1 }
 0x1dc   : > { %v882_v47 = vadd.f32 %v881_v46, %v880_v45  ;;  %v883_v48 = vpop.f32.mrb[10].mxu1 }
 0x1dd   : > { %v884_v49 = vpop.f32.mrb[11].mxu1 }
 0x1de   : > { %v689_v50 = vadd.f32 %v882_v47, %v1130_v21  ;;  %v885_v51 = vadd.f32 %v884_v49, %v883_v48 }
 0x1e0   : > { %734 = vst.msk [vmem:[%s1135_s21 + $0x30] sm:$0xff] %vm727_vm1, %v689_v50  ;;  %v692_v52 = vadd.f32 %v885_v51, %v1130_v21 }
 0x1e2   : > { %735 = vst.msk [vmem:[%s1135_s21 + $0x38] sm:$0xff] %vm727_vm1, %v692_v52  ;;  %v886_v53 = vpop.f32.mrb[12].mxu1 }
 0x1e3   : > { %v887_v54 = vpop.f32.mrb[13].mxu1 }
 0x1e4   : > { %v888_v55 = vadd.f32 %v887_v54, %v886_v53  ;;  %v889_v56 = vpop.f32.mrb[14].mxu1 }
 0x1e5   : > { %v890_v57 = vpop.f32.mrb[15].mxu1 }
 0x1e6   : > { %v697_v58 = vadd.f32 %v888_v55, %v1130_v21  ;;  %v891_v59 = vadd.f32 %v890_v57, %v889_v56 }
 0x1e8   : > { %736 = vst.msk [vmem:[%s1135_s21 + $0x40] sm:$0xff] %vm727_vm1, %v697_v58  ;;  %v700_v60 = vadd.f32 %v891_v59, %v1130_v21 }
 0x1ea   : > { %737 = vst.msk [vmem:[%s1135_s21 + $0x48] sm:$0xff] %vm727_vm1, %v700_v60  ;;  %v892_v61 = vpop.f32.mrb[16].mxu1 }
 0x1eb   : > { %v893_v62 = vpop.f32.mrb[17].mxu1 }
 0x1ec   : > { %v894_v63 = vadd.f32 %v893_v62, %v892_v61  ;;  %v895_v0 = vpop.f32.mrb[18].mxu1 }
 0x1ed   : > { %v896_v1 = vpop.f32.mrb[19].mxu1 }
 0x1ee   : > { %v705_v2 = vadd.f32 %v894_v63, %v1130_v21  ;;  %v897_v3 = vadd.f32 %v896_v1, %v895_v0 }
 0x1f0   : > { %738 = vst.msk [vmem:[%s1135_s21 + $0x50] sm:$0xff] %vm727_vm1, %v705_v2  ;;  %v708_v4 = vadd.f32 %v897_v3, %v1130_v21 }
 0x1f2   : > { %739 = vst.msk [vmem:[%s1135_s21 + $0x58] sm:$0xff] %vm727_vm1, %v708_v4  ;;  %v898_v5 = vpop.f32.mrb[20].mxu1 }
 0x1f3   : > { %v899_v6 = vpop.f32.mrb[21].mxu1 }
 0x1f4   : > { %v900_v7 = vadd.f32 %v899_v6, %v898_v5  ;;  %v901_v8 = vpop.f32.mrb[22].mxu1 }
 0x1f5   : > { %v902_v9 = vpop.f32.mrb[23].mxu1 }
 0x1f6   : > { %v713_v10 = vadd.f32 %v900_v7, %v1130_v21  ;;  %v903_v11 = vadd.f32 %v902_v9, %v901_v8 }
 0x1f8   : > { %740 = vst.msk [vmem:[%s1135_s21 + $0x60] sm:$0xff] %vm727_vm1, %v713_v10  ;;  %v716_v12 = vadd.f32 %v903_v11, %v1130_v21 }
 0x1fa   : > { %741 = vst.msk [vmem:[%s1135_s21 + $0x68] sm:$0xff] %vm727_vm1, %v716_v12  ;;  %v904_v13 = vpop.f32.mrb[24].mxu1 }
 0x1fb   : > { %v905_v14 = vpop.f32.mrb[25].mxu1 }
 0x1fc   : > { %v906_v15 = vadd.f32 %v905_v14, %v904_v13  ;;  %v907_v16 = vpop.f32.mrb[26].mxu1 }
 0x1fd   : > { %v908_v17 = vpop.f32.mrb[27].mxu1 }
 0x1fe   : > { %v721_v18 = vadd.f32 %v906_v15, %v1130_v21  ;;  %v909_v19 = vadd.f32 %v908_v17, %v907_v16 }
 0x200   : > { %742 = vst.msk [vmem:[%s1135_s21 + $0x70] sm:$0xff] %vm727_vm1, %v721_v18  ;;  %v724_v20 = vadd.f32 %v909_v19, %v1130_v21 }
 0x202   : > { %743 = vst.msk [vmem:[%s1135_s21 + $0x78] sm:$0xff] %vm727_vm1, %v724_v20 }
 0x203 PF: > { %s15_s18 = sadd.s32 1, %s968_s18  }
 0x204   : > { %p12_p4 = scmp.ge.s32.totalorder %s15_s18, 4  }
 0x206   :  { %14 = sbr.rel (!%p12_p4) target bundleno = 1 (0x1), region = 70 }

</bundles_post_ra>
